<compile_context>
chip_gen: v5e
topology: v5e:2x2
jax: 0.10.0
libtpu: 0.0.40
codegen_flags: <defaults>
</compile_context>

<pallas_src>
import jax
import jax.numpy as jnp
from jax import lax
from jax.experimental import pallas as pl
from jax.experimental.pallas import tpu as pltpu


def _round_up(x, m):
    return (x + m - 1) // m * m


def _cdiv(a, b):
    return (a + b - 1) // b


def dcn_cell_kernel(feature_ref, x0_ref, w_ref, b_ref, out_ref):
    feature = feature_ref[...]
    # inter = feature @ W.T + b ; contract dim 1 of both operands so the
    # PyTorch [F_out, F_in] weight is used as-is (no transpose traffic).
    inter = lax.dot_general(
        feature,
        w_ref[...],
        dimension_numbers=(((1,), (1,)), ((), ())),
        preferred_element_type=jnp.float32,
    )
    inter = inter + b_ref[...].astype(jnp.float32)
    # out = x0 * inter + feature   (VPU elementwise epilogue in f32)
    out = x0_ref[...].astype(jnp.float32) * inter + feature.astype(jnp.float32)
    out_ref[...] = out.astype(out_ref.dtype)


def dcn_cell(feature, x0, weight, bias, *,
             act_tile_target_bytes=24 * 1024 * 1024,
             single_buffer_weight=True):
    """feature, x0: [B, F]; weight: [F, F] (PyTorch layout); bias: [F]."""
    B, F = feature.shape
    F_out, F_in = weight.shape
    assert F_in == F and F_out == F, "DCNCell uses a square projection"
    assert x0.shape == (B, F) and bias.shape == (F,)

    dtype = feature.dtype
    itemsize = jnp.dtype(dtype).itemsize

    # --- per-generation VMEM budget -------------------------------------
    try:
        vmem_cap = int(pltpu.get_tpu_info().vmem_capacity_bytes)
    except Exception:
        vmem_cap = 64 * 1024 * 1024  # conservative (v7x-sized) fallback
    if vmem_cap <= 0:
        vmem_cap = 64 * 1024 * 1024
    budget = (vmem_cap * 3) // 4          # ~96 MiB on v5e/v6e, ~48 MiB on v7x

    # dtype-dependent sublane multiple: 8 (f32), 16 (bf16), 32 (int8/fp8)
    sublane = {4: 8, 2: 16, 1: 32}.get(itemsize, 8)

    # Resident weight + bias (conservatively counted as double-buffered; with
    # pl.Buffered(1) on the weight it is actually 1x, so this only adds slack).
    resident = 2 * (F * F + F) * itemsize
    headroom = 4 << 20                    # Mosaic internal scratch, etc.

    # Per-row activation footprint: double-buffered feature/x0/out tiles plus
    # the f32 intermediates (inter, upcasts, pre-cast out) live in the body.
    per_row = 2 * 3 * F * itemsize + 3 * F * 4

    avail = min(budget - resident - headroom, act_tile_target_bytes)
    if avail < sublane * per_row:
        # TODO(synk): N-tiled-weight variant (second grid axis over F_out) for
        # feature counts whose weight does not fit VMEM-resident.
        raise NotImplementedError(
            f"featureNum={F} too large for the resident-weight DCNCell kernel")

    TB = (avail // per_row) // sublane * sublane
    # Keep >=2 grid steps when possible so v7x's two TensorCores both get work
    # (dimension_semantics=('parallel',) shards the batch axis across cores).
    TB = min(TB, _round_up(_cdiv(B, 2), sublane))
    TB = max(TB, sublane)

    grid = (pl.cdiv(B, TB),)

    needed = resident + TB * per_row
    vmem_limit = int(min(max(needed + (8 << 20), 32 << 20),
                         vmem_cap - (8 << 20)))

    cost = pl.CostEstimate(
        flops=2 * B * F * F,
        transcendentals=0,
        bytes_accessed=(3 * B * F + F * F + F) * itemsize,
    )

    bias2d = bias.reshape(1, F)

    def build(use_single_buffer_weight):
        const_kwargs = {}
        if use_single_buffer_weight:
            # Constant index_map -> the weight/bias never change; a single
            # buffer halves their resident VMEM cost (matters at large F on
            # v7x's 64 MiB VMEM).
            const_kwargs["pipeline_mode"] = pl.Buffered(1)
        return pl.pallas_call(
            dcn_cell_kernel,
            out_shape=jax.ShapeDtypeStruct((B, F), dtype),
            grid_spec=pltpu.PrefetchScalarGridSpec(
                num_scalar_prefetch=0,
                grid=grid,
                in_specs=[
                    pl.BlockSpec((TB, F), lambda i: (i, 0)),   # feature tile
                    pl.BlockSpec((TB, F), lambda i: (i, 0)),   # x0 tile
                    pl.BlockSpec((F, F), lambda i: (0, 0), **const_kwargs),   # weight
                    pl.BlockSpec((1, F), lambda i: (0, 0), **const_kwargs),   # bias
                ],
                out_specs=pl.BlockSpec((TB, F), lambda i: (i, 0)),
            ),
            compiler_params=pltpu.CompilerParams(
                dimension_semantics=("parallel",),
                vmem_limit_bytes=vmem_limit,
            ),
            cost_estimate=cost,
        )

    if single_buffer_weight:
        try:
            return build(True)(feature, x0, weight, bias2d)
        except Exception:
            # pipeline_mode=pl.Buffered(1) not supported here -> default
            # double-buffered constant blocks (still VMEM-resident).
            pass
    return build(False)(feature, x0, weight, bias2d)


if __name__ == "__main__":
    key = jax.random.PRNGKey(0)

    def run_case(B, F, dtype=jnp.float32, atol=1e-4, rtol=1e-4):
        kk = jax.random.fold_in(key, B * 10007 + F)
        k_feat, k_x0, k_w, k_b = jax.random.split(kk, 4)
        feature = jax.random.normal(k_feat, (B, F), dtype=jnp.float32).astype(dtype)
        x0 = jax.random.normal(k_x0, (B, F), dtype=jnp.float32).astype(dtype)
        # PyTorch layout: weight [F_out, F_in], bias [F_out]
        weight = (jax.random.normal(k_w, (F, F), dtype=jnp.float32) * 0.1).astype(dtype)
        bias = (jax.random.normal(k_b, (F,), dtype=jnp.float32) * 0.1).astype(dtype)

        out = jax.block_until_ready(dcn_cell(feature, x0, weight, bias))

        f32 = jnp.float32
        ref = (x0.astype(f32) * (feature.astype(f32) @ weight.astype(f32).T
                                 + bias.astype(f32))
               + feature.astype(f32)).astype(dtype)
        assert out.shape == (B, F), (out.shape, B, F)
        assert jnp.allclose(out.astype(f32), ref.astype(f32),
                            atol=atol, rtol=rtol), (B, F, str(dtype))

    # Module-spec small shape (featureNum=32, batch=8): narrow F, single step.
    run_case(8, 32)
    # Two grid steps with a ragged final batch tile.
    run_case(100, 32)
    # Larger batch & F: exercises batch tiling with both-core-friendly grid.
    run_case(1040, 96)
    # bf16 end-to-end (sublane=16 path, halved HBM traffic), f32 accumulation.
    run_case(48, 32, dtype=jnp.bfloat16, atol=3e-2, rtol=3e-2)

    print("KERNEL_OK")
</pallas_src>

<mosaic_0001>
module attributes {stable_mosaic.version = 11 : i64} {
  func.func @dcn_cell_kernel(%arg0: i32, %arg1: memref<8x32xf32, #tpu.memory_space<vmem>>, %arg2: memref<8x32xf32, #tpu.memory_space<vmem>>, %arg3: memref<32x32xf32, #tpu.memory_space<vmem>>, %arg4: memref<1x32xf32, #tpu.memory_space<vmem>>, %arg5: memref<8x32xf32, #tpu.memory_space<vmem>>) attributes {dimension_semantics = [#tpu.dimension_semantics<parallel>], iteration_bounds = array<i64: 1>, scalar_prefetch = 0 : i64, scratch_operands = 0 : i64, tpu.core_type = #tpu.core_type<tc>, window_params = [{transform_indices = @transform_0, window_bounds = array<i64: 8, 32>}, {transform_indices = @transform_1, window_bounds = array<i64: 8, 32>}, {pipeline_mode = #tpu.pipeline_mode<synchronous>, transform_indices = @transform_2, window_bounds = array<i64: 32, 32>}, {pipeline_mode = #tpu.pipeline_mode<synchronous>, transform_indices = @transform_3, window_bounds = array<i64: 1, 32>}, {transform_indices = @transform_4, window_bounds = array<i64: 8, 32>}]} {
    %c0 = arith.constant 0 : index
    %c0_0 = arith.constant 0 : index
    %0 = vector.load %arg1[%c0, %c0_0] : memref<8x32xf32, #tpu.memory_space<vmem>>, vector<8x32xf32>
    %c0_1 = arith.constant 0 : index
    %c0_2 = arith.constant 0 : index
    %1 = vector.load %arg3[%c0_1, %c0_2] : memref<32x32xf32, #tpu.memory_space<vmem>>, vector<32x32xf32>
    %cst = arith.constant dense<0.000000e+00> : vector<8x32xf32>
    %2 = tpu.matmul %0, %1, %cst {dimension_numbers = #tpu.dot_dimension_numbers<[1], [1], [0], [0], [0, 0, 1, 0], [], []>} : vector<8x32xf32>, vector<32x32xf32>, vector<8x32xf32> -> vector<8x32xf32>
    %c0_3 = arith.constant 0 : index
    %c0_4 = arith.constant 0 : index
    %3 = vector.load %arg4[%c0_3, %c0_4] : memref<1x32xf32, #tpu.memory_space<vmem>>, vector<1x32xf32>
    %4 = vector.broadcast %3 : vector<1x32xf32> to vector<8x32xf32>
    %5 = arith.addf %2, %4 : vector<8x32xf32>
    %c0_5 = arith.constant 0 : index
    %c0_6 = arith.constant 0 : index
    %6 = vector.load %arg2[%c0_5, %c0_6] : memref<8x32xf32, #tpu.memory_space<vmem>>, vector<8x32xf32>
    %7 = arith.mulf %6, %5 : vector<8x32xf32>
    %8 = arith.addf %7, %0 : vector<8x32xf32>
    %c0_7 = arith.constant 0 : index
    %c0_8 = arith.constant 0 : index
    %9 = vector.load %arg5[%c0_7, %c0_8] : memref<8x32xf32, #tpu.memory_space<vmem>>, vector<8x32xf32>
    tpu.vector_store %arg5[%c0_7, %c0_8], %8 {strides = array<i32>} : memref<8x32xf32, #tpu.memory_space<vmem>>, vector<8x32xf32>,
    return
  }
  func.func @transform_0(%arg0: i32) -> (i32, i32) {
    %c0_i32 = arith.constant 0 : i32
    %c0_i32_0 = arith.constant 0 : i32
    return %arg0, %c0_i32 : i32, i32
  }
  func.func @transform_1(%arg0: i32) -> (i32, i32) {
    %c0_i32 = arith.constant 0 : i32
    %c0_i32_0 = arith.constant 0 : i32
    return %arg0, %c0_i32 : i32, i32
  }
  func.func @transform_2(%arg0: i32) -> (i32, i32) {
    %c0_i32 = arith.constant 0 : i32
    %c0_i32_0 = arith.constant 0 : i32
    %c0_i32_1 = arith.constant 0 : i32
    return %c0_i32, %c0_i32_0 : i32, i32
  }
  func.func @transform_3(%arg0: i32) -> (i32, i32) {
    %c0_i32 = arith.constant 0 : i32
    %c0_i32_0 = arith.constant 0 : i32
    %c0_i32_1 = arith.constant 0 : i32
    return %c0_i32, %c0_i32_0 : i32, i32
  }
  func.func @transform_4(%arg0: i32) -> (i32, i32) {
    %c0_i32 = arith.constant 0 : i32
    %c0_i32_0 = arith.constant 0 : i32
    return %arg0, %c0_i32 : i32, i32
  }
}

module attributes {stable_mosaic.version = 11 : i64} {
  func.func @dcn_cell_kernel(%arg0: i32, %arg1: memref<8x32xf32, #tpu.memory_space<vmem>>, %arg2: memref<8x32xf32, #tpu.memory_space<vmem>>, %arg3: memref<32x32xf32, #tpu.memory_space<vmem>>, %arg4: memref<1x32xf32, #tpu.memory_space<vmem>>, %arg5: memref<8x32xf32, #tpu.memory_space<vmem>>) attributes {dimension_semantics = [#tpu.dimension_semantics<parallel>], iteration_bounds = array<i64: 1>, scalar_prefetch = 0 : i64, scratch_operands = 0 : i64, tpu.core_type = #tpu.core_type<tc>, window_params = [{transform_indices = @transform_0, window_bounds = array<i64: 8, 32>}, {transform_indices = @transform_1, window_bounds = array<i64: 8, 32>}, {pipeline_mode = #tpu.pipeline_mode<synchronous>, transform_indices = @transform_2, window_bounds = array<i64: 32, 32>}, {pipeline_mode = #tpu.pipeline_mode<synchronous>, transform_indices = @transform_3, window_bounds = array<i64: 1, 32>}, {transform_indices = @transform_4, window_bounds = array<i64: 8, 32>}]} {
    %c0 = arith.constant 0 : index
    %c0_0 = arith.constant 0 : index
    %0 = vector.load %arg1[%c0, %c0_0] : memref<8x32xf32, #tpu.memory_space<vmem>>, vector<8x32xf32>
    %c0_1 = arith.constant 0 : index
    %c0_2 = arith.constant 0 : index
    %1 = vector.load %arg3[%c0_1, %c0_2] : memref<32x32xf32, #tpu.memory_space<vmem>>, vector<32x32xf32>
    %cst = arith.constant dense<0.000000e+00> : vector<8x32xf32>
    %2 = tpu.matmul %0, %1, %cst {dimension_numbers = #tpu.dot_dimension_numbers<[1], [1], [0], [0], [0, 0, 1, 0], [], []>} : vector<8x32xf32>, vector<32x32xf32>, vector<8x32xf32> -> vector<8x32xf32>
    %c0_3 = arith.constant 0 : index
    %c0_4 = arith.constant 0 : index
    %3 = vector.load %arg4[%c0_3, %c0_4] : memref<1x32xf32, #tpu.memory_space<vmem>>, vector<1x32xf32>
    %4 = vector.broadcast %3 : vector<1x32xf32> to vector<8x32xf32>
    %5 = arith.addf %2, %4 : vector<8x32xf32>
    %c0_5 = arith.constant 0 : index
    %c0_6 = arith.constant 0 : index
    %6 = vector.load %arg2[%c0_5, %c0_6] : memref<8x32xf32, #tpu.memory_space<vmem>>, vector<8x32xf32>
    %7 = arith.mulf %6, %5 : vector<8x32xf32>
    %8 = arith.addf %7, %0 : vector<8x32xf32>
    %c0_7 = arith.constant 0 : index
    %c0_8 = arith.constant 0 : index
    %9 = vector.load %arg5[%c0_7, %c0_8] : memref<8x32xf32, #tpu.memory_space<vmem>>, vector<8x32xf32>
    tpu.vector_store %arg5[%c0_7, %c0_8], %8 {strides = array<i32>} : memref<8x32xf32, #tpu.memory_space<vmem>>, vector<8x32xf32>,
    return
  }
  func.func @transform_0(%arg0: i32) -> (i32, i32) {
    %c0_i32 = arith.constant 0 : i32
    %c0_i32_0 = arith.constant 0 : i32
    return %arg0, %c0_i32 : i32, i32
  }
  func.func @transform_1(%arg0: i32) -> (i32, i32) {
    %c0_i32 = arith.constant 0 : i32
    %c0_i32_0 = arith.constant 0 : i32
    return %arg0, %c0_i32 : i32, i32
  }
  func.func @transform_2(%arg0: i32) -> (i32, i32) {
    %c0_i32 = arith.constant 0 : i32
    %c0_i32_0 = arith.constant 0 : i32
    %c0_i32_1 = arith.constant 0 : i32
    return %c0_i32, %c0_i32_0 : i32, i32
  }
  func.func @transform_3(%arg0: i32) -> (i32, i32) {
    %c0_i32 = arith.constant 0 : i32
    %c0_i32_0 = arith.constant 0 : i32
    %c0_i32_1 = arith.constant 0 : i32
    return %c0_i32, %c0_i32_0 : i32, i32
  }
  func.func @transform_4(%arg0: i32) -> (i32, i32) {
    %c0_i32 = arith.constant 0 : i32
    %c0_i32_0 = arith.constant 0 : i32
    return %arg0, %c0_i32 : i32, i32
  }
}

</mosaic_0001>

<bundles_post_ra>
// kernel: tpu_custom_call.1
= control target key start
LH: loop header
LB: loop body
LE: loop exit
PB: predicated region body
PF: predicated region fallthrough
CT: control target
= control target key end

     0   :  { %9 = vsyncpa [#allocation3], 0  ;;  %s294_s0 = inlined_call_operand.hbm [shape: f32[8,32], index: 0, kind: input, shape index: {}]   ;;  %s295_s1 = inlined_call_operand.hbm [shape: f32[8,32], index: 1, kind: input, shape index: {}]   ;;  %s296_s2 = inlined_call_operand.hbm [shape: f32[32,32], index: 2, kind: input, shape index: {}]   ;;  %s297_s3 = inlined_call_operand.vmem [shape: f32[1,32], index: 3, kind: input, shape index: {}]   ;;  %s298_s4 = inlined_call_operand.hbm [shape: f32[8,32], index: 4, kind: output, shape index: {}]  }
   0x1   :  { %10 = vsyncpa [#allocation6], 0  ;;  %s28_s17 = sshll.u32 %s295_s1, 4  ;;  %s29_s17 = int_to_ptr.hbm [resolvable:$true] %s28_s17 }
   0x2   :  { %11 = vsyncpa [#allocation4], 0  ;;  %s242_s18 = smov [#allocation5]   ;;  %s17_s22 = sshll.u32 %s294_s0, 4  ;;  %s18_s22 = int_to_ptr.hbm [resolvable:$true] %s17_s22 }
   0x3   :  { %s30_s19 = sshll.u32 %s242_s18, 4  ;;  %s243_s23 = smov [#allocation2]   ;;  %s31_s19 = int_to_ptr.vmem [resolvable:$true] %s30_s19 }
   0x4   :  { %33 = dma.hbm_to_vmem [thread:$0]  %s29_s17, 128, %s31_s19, [#allocation6]  }
   0x5   :  { %s19_s24 = sshll.u32 %s243_s23, 4  ;;  %s38_s27 = sshll.u32 %s296_s2, 4  ;;  %s20_s24 = int_to_ptr.vmem [resolvable:$true] %s19_s24  ;;  %s39_s27 = int_to_ptr.hbm [resolvable:$true] %s38_s27 }
   0x6   :  { %22 = dma.hbm_to_vmem [thread:$0]  %s18_s22, 128, %s20_s24, [#allocation3]  }
   0x7   :  { %s244_s1 = smov [#allocation7]   ;;  %s245_s29 = smov 128  }
   0x8   :  { %s40_s28 = sshll.u32 %s244_s1, 4  ;;  %s246_s30 = smov 8   ;;  %s41_s28 = int_to_ptr.vmem [resolvable:$true] %s40_s28 }
   0x9   :  { %46 = dma.hbm_to_vmem [thread:$0]  %s39_s27, 512, %s41_s28, [#allocation6], %s245_s29, %s245_s29, %s246_s30  }
   0xa   :  { %236 = dma.done.wait [#allocation3], 128  }
   0xb   :  { %237 = vsyncadd [#allocation3], 4294967168 }
   0xc   :  { %238 = dma.done.wait [#allocation6], 640  }
   0xd   :  { %239 = vsyncadd [#allocation6], 4294966656  ;;  %vm70_vm0 = vcmask 261120   ;;  %v65_v0 = vld [vmem:[#allocation7 + $0x18] sm:$0xff]  ;;  %v64_v1 = vld [vmem:[#allocation7 + $0x10] sm:$0xff]  ;;  %s247_s5 = smov [#allocation8]  }
   0xe   :  { %128 = vmatpush.xpose.msk.msra.mxu0 %vm70_vm0, %v65_v0  ;;  %v63_v2 = vld [vmem:[#allocation7 + $0x8] sm:$0xff]  ;;  %v62_v3 = vld [vmem:[#allocation7] sm:$0xff]  ;;  %v61_v4 = vld [vmem:[#allocation2] sm:$0xff]  ;;  %s115_s6 = sshll.u32 %s247_s5, 4  ;;  %s117_s9 = sshll.u32 %s298_s4, 4  ;;  %s116_s6 = int_to_ptr.vmem [resolvable:$true] %s115_s6  ;;  %s118_s9 = int_to_ptr.hbm [resolvable:$true] %s117_s9 }
   0xf   :  { %v139_v5 = vld [vmem:[%s297_s3] ss:$0 sm:$0xff]  ;;  %v106_v7 = vld [vmem:[#allocation5] sm:$0xff] }
  0x12   :  { %129 = vmatpush.xpose.msk.msra.mxu0 %vm70_vm0, %v64_v1 }
  0x16   :  { %130 = vmatpush.xpose.msk.msra.mxu0 %vm70_vm0, %v63_v2 }
  0x1a   :  { %131 = vmatpush.xpose.msk.msra.mxu0 %vm70_vm0, %v62_v3 }
  0x1d   :  { %132 = vmatmul.msk.f32.vlgmr.msra.gmra.mxu0 %vm70_vm0, %v61_v4 }
  0x9a   :  { %v103_v6 = vpop.f32.mrf.mxu0 }
  0x9b   :  { %v104_v8 = vadd.f32 %v139_v5, %v103_v6 }
  0x9d   :  { %v107_v9 = vmul.f32 %v106_v7, %v104_v8 }
  0x9f   :  { %v108_v10 = vadd.f32 %v107_v9, %v61_v4 }
  0xa1   :  { %109 = vst.msk [vmem:[#allocation8] sm:$0xff] %vm70_vm0, %v108_v10 }
  0xa2   :  { %120 = dma.vmem_to_hbm [thread:$0]  %s116_s6, 128, %s118_s9, [#allocation4]  }
  0xa3   :  { %240 = dma.done.wait [#allocation4], 128  }
  0xa4   :  { %241 = vsyncadd [#allocation4], 4294967168 }
  0xa5   :  { %125 = vsyncpa [#allocation3], 1 }
  0xa6   :  { %126 = vsyncpa [#allocation6], 1 }
  0xa7   :  { %127 = vsyncpa [#allocation4], 1 }

// kernel: tpu_custom_call.1
= control target key start
LH: loop header
LB: loop body
LE: loop exit
PB: predicated region body
PF: predicated region fallthrough
CT: control target
= control target key end

     0   :  { %9 = vsyncpa [#allocation3], 0  ;;  %s294_s0 = inlined_call_operand.hbm [shape: f32[8,32], index: 0, kind: input, shape index: {}]   ;;  %s295_s1 = inlined_call_operand.hbm [shape: f32[8,32], index: 1, kind: input, shape index: {}]   ;;  %s296_s2 = inlined_call_operand.hbm [shape: f32[32,32], index: 2, kind: input, shape index: {}]   ;;  %s297_s3 = inlined_call_operand.vmem [shape: f32[1,32], index: 3, kind: input, shape index: {}]   ;;  %s298_s4 = inlined_call_operand.hbm [shape: f32[8,32], index: 4, kind: output, shape index: {}]  }
   0x1   :  { %10 = vsyncpa [#allocation6], 0  ;;  %s28_s17 = sshll.u32 %s295_s1, 4  ;;  %s29_s17 = int_to_ptr.hbm [resolvable:$true] %s28_s17 }
   0x2   :  { %11 = vsyncpa [#allocation4], 0  ;;  %s242_s18 = smov [#allocation5]   ;;  %s17_s22 = sshll.u32 %s294_s0, 4  ;;  %s18_s22 = int_to_ptr.hbm [resolvable:$true] %s17_s22 }
   0x3   :  { %s30_s19 = sshll.u32 %s242_s18, 4  ;;  %s243_s23 = smov [#allocation2]   ;;  %s31_s19 = int_to_ptr.vmem [resolvable:$true] %s30_s19 }
   0x4   :  { %33 = dma.hbm_to_vmem [thread:$0]  %s29_s17, 128, %s31_s19, [#allocation6]  }
   0x5   :  { %s19_s24 = sshll.u32 %s243_s23, 4  ;;  %s38_s27 = sshll.u32 %s296_s2, 4  ;;  %s20_s24 = int_to_ptr.vmem [resolvable:$true] %s19_s24  ;;  %s39_s27 = int_to_ptr.hbm [resolvable:$true] %s38_s27 }
   0x6   :  { %22 = dma.hbm_to_vmem [thread:$0]  %s18_s22, 128, %s20_s24, [#allocation3]  }
   0x7   :  { %s244_s1 = smov [#allocation7]   ;;  %s245_s29 = smov 128  }
   0x8   :  { %s40_s28 = sshll.u32 %s244_s1, 4  ;;  %s246_s30 = smov 8   ;;  %s41_s28 = int_to_ptr.vmem [resolvable:$true] %s40_s28 }
   0x9   :  { %46 = dma.hbm_to_vmem [thread:$0]  %s39_s27, 512, %s41_s28, [#allocation6], %s245_s29, %s245_s29, %s246_s30  }
   0xa   :  { %236 = dma.done.wait [#allocation3], 128  }
   0xb   :  { %237 = vsyncadd [#allocation3], 4294967168 }
   0xc   :  { %238 = dma.done.wait [#allocation6], 640  }
   0xd   :  { %239 = vsyncadd [#allocation6], 4294966656  ;;  %vm70_vm0 = vcmask 261120   ;;  %v65_v0 = vld [vmem:[#allocation7 + $0x18] sm:$0xff]  ;;  %v64_v1 = vld [vmem:[#allocation7 + $0x10] sm:$0xff]  ;;  %s247_s5 = smov [#allocation8]  }
   0xe   :  { %128 = vmatpush.xpose.msk.msra.mxu0 %vm70_vm0, %v65_v0  ;;  %v63_v2 = vld [vmem:[#allocation7 + $0x8] sm:$0xff]  ;;  %v62_v3 = vld [vmem:[#allocation7] sm:$0xff]  ;;  %v61_v4 = vld [vmem:[#allocation2] sm:$0xff]  ;;  %s115_s6 = sshll.u32 %s247_s5, 4  ;;  %s117_s9 = sshll.u32 %s298_s4, 4  ;;  %s116_s6 = int_to_ptr.vmem [resolvable:$true] %s115_s6  ;;  %s118_s9 = int_to_ptr.hbm [resolvable:$true] %s117_s9 }
   0xf   :  { %v139_v5 = vld [vmem:[%s297_s3] ss:$0 sm:$0xff]  ;;  %v106_v7 = vld [vmem:[#allocation5] sm:$0xff] }
  0x12   :  { %129 = vmatpush.xpose.msk.msra.mxu0 %vm70_vm0, %v64_v1 }
  0x16   :  { %130 = vmatpush.xpose.msk.msra.mxu0 %vm70_vm0, %v63_v2 }
  0x1a   :  { %131 = vmatpush.xpose.msk.msra.mxu0 %vm70_vm0, %v62_v3 }
  0x1d   :  { %132 = vmatmul.msk.f32.vlgmr.msra.gmra.mxu0 %vm70_vm0, %v61_v4 }
  0x9a   :  { %v103_v6 = vpop.f32.mrf.mxu0 }
  0x9b   :  { %v104_v8 = vadd.f32 %v139_v5, %v103_v6 }
  0x9d   :  { %v107_v9 = vmul.f32 %v106_v7, %v104_v8 }
  0x9f   :  { %v108_v10 = vadd.f32 %v107_v9, %v61_v4 }
  0xa1   :  { %109 = vst.msk [vmem:[#allocation8] sm:$0xff] %vm70_vm0, %v108_v10 }
  0xa2   :  { %120 = dma.vmem_to_hbm [thread:$0]  %s116_s6, 128, %s118_s9, [#allocation4]  }
  0xa3   :  { %240 = dma.done.wait [#allocation4], 128  }
  0xa4   :  { %241 = vsyncadd [#allocation4], 4294967168 }
  0xa5   :  { %125 = vsyncpa [#allocation3], 1 }
  0xa6   :  { %126 = vsyncpa [#allocation6], 1 }
  0xa7   :  { %127 = vsyncpa [#allocation4], 1 }

</bundles_post_ra>
